<compile_context>
chip_gen: v7x
topology: tpu7x:2x2x1
jax: 0.10.0
libtpu: 0.0.40
codegen_flags: <defaults>
</compile_context>

<pallas_src>
import jax
import jax.numpy as jnp
from jax.experimental import pallas as pl
from jax.experimental.pallas import tpu as pltpu


def _sse_kernel(x_ref, w_ref, b_ref, o_ref):
    # x_ref: (C, HW_tile) tile of one batch element (batch dim squeezed out).
    x = x_ref[...]                                            # input dtype, no cast/copy

    # Per-pixel channel reduction: (1, C) @ (C, HW_tile) -> (1, HW_tile), f32 acc.
    z = jnp.dot(w_ref[...], x, preferred_element_type=jnp.float32)
    z = z + b_ref[...]                                        # (1, 1) bias, lane broadcast
    gate = jax.nn.sigmoid(z)                                  # (1, HW_tile) f32

    # Scale: broadcast the spatial gate over channels (sublanes); lane-dense store.
    o_ref[...] = x * gate.astype(x.dtype)


def _pick_hw_tile(HW, C, itemsize):
    """Largest lane-dense HW tile s.t. double-buffered in+out stays ~<= 8 MiB."""
    if HW <= 1024:
        return HW                                  # full extent: always a legal block
    budget = 8 * 1024 * 1024
    per_lane = 4 * C * itemsize                    # (in + out) x 2 (double buffering)
    t = max(128, (budget // per_lane) // 128 * 128)
    t = min(t, HW)
    # Prefer a tile that divides HW; otherwise rely on a masked partial last tile.
    while t > 128 and HW % t != 0:
        t -= 128
    return t


def spatial_squeeze_excitation(x_nchw, w_row, bias):
    """sSE forward.

    x_nchw: (B, C, H, W).
    w_row:  (1, C)  == Conv2d(C, 1, 1).weight[:, :, 0, 0]   (float32).
    bias:   (1, 1)  == Conv2d(C, 1, 1).bias.reshape(1, 1)   (float32).
    """
    B, C, H, W = x_nchw.shape
    HW = H * W
    x = x_nchw.reshape(B, C, HW)                   # metadata-only reshape, no HBM traffic

    hw_tile = _pick_hw_tile(HW, C, x.dtype.itemsize)
    n_hw = pl.cdiv(HW, hw_tile)

    tile_bytes = 2 * C * hw_tile * x.dtype.itemsize           # one in + one out buffer
    vmem_limit = int(min(max(4 * tile_bytes, 16 << 20), 64 << 20))

    out = pl.pallas_call(
        _sse_kernel,
        out_shape=jax.ShapeDtypeStruct((B, C, HW), x.dtype),
        grid_spec=pltpu.PrefetchScalarGridSpec(
            num_scalar_prefetch=0,
            grid=(B, n_hw),
            in_specs=[
                pl.BlockSpec((pl.Squeezed(), C, hw_tile), lambda b, t: (b, 0, t)),
                pl.BlockSpec((1, C), lambda b, t: (0, 0)),
                pl.BlockSpec((1, 1), lambda b, t: (0, 0)),
            ],
            out_specs=pl.BlockSpec((pl.Squeezed(), C, hw_tile), lambda b, t: (b, 0, t)),
        ),
        compiler_params=pltpu.CompilerParams(
            dimension_semantics=("parallel", "parallel"),
            vmem_limit_bytes=vmem_limit),
    )(x, w_row, bias)

    return out.reshape(B, C, H, W)


def spatial_squeeze_excitation_ref(x_nchw, w_row, bias):
    """Pure-JAX reference matching the PyTorch forward."""
    logits = jnp.einsum('bchw,c->bhw', x_nchw, w_row[0]) + bias[0, 0]
    gate = jax.nn.sigmoid(logits)                              # (B, H, W)
    return x_nchw * gate[:, None, :, :]


if __name__ == "__main__":
    B, C, H, W = 2, 4, 16, 16

    key = jax.random.PRNGKey(0)
    k_x, k_w, k_b = jax.random.split(key, 3)

    x = jax.random.normal(k_x, (B, C, H, W), dtype=jnp.float32)
    # Conv2d(C, 1, kernel_size=1, bias=True): weight (1, C, 1, 1) -> (1, C); bias (1,) -> (1, 1).
    w_row = 0.5 * jax.random.normal(k_w, (1, C), dtype=jnp.float32)
    bias = 0.5 * jax.random.normal(k_b, (1, 1), dtype=jnp.float32)

    out = spatial_squeeze_excitation(x, w_row, bias)
    out = jax.block_until_ready(out)

    ref = spatial_squeeze_excitation_ref(x, w_row, bias)
    assert out.shape == (B, C, H, W)
    assert jnp.allclose(out, ref, atol=1e-5, rtol=1e-5), "mismatch vs reference"

    print("KERNEL_OK")
</pallas_src>

<mosaic_0001>
module attributes {stable_mosaic.version = 11 : i64} {
  func.func @_sse_kernel(%arg0: i32, %arg1: i32, %arg2: memref<1x4x256xf32, #tpu.memory_space<vmem>>, %arg3: memref<1x4xf32, #tpu.memory_space<vmem>>, %arg4: memref<1x1xf32, #tpu.memory_space<vmem>>, %arg5: memref<1x4x256xf32, #tpu.memory_space<vmem>>) attributes {dimension_semantics = [#tpu.dimension_semantics<parallel>, #tpu.dimension_semantics<parallel>], iteration_bounds = array<i64: 2, 1>, scalar_prefetch = 0 : i64, scratch_operands = 0 : i64, tpu.core_type = #tpu.core_type<tc>, window_params = [{transform_indices = @transform_0, window_bounds = array<i64: 1, 4, 256>}, {pipeline_mode = #tpu.pipeline_mode<synchronous>, transform_indices = @transform_1, window_bounds = array<i64: 1, 4>}, {pipeline_mode = #tpu.pipeline_mode<synchronous>, transform_indices = @transform_2, window_bounds = array<i64: 1, 1>}, {transform_indices = @transform_3, window_bounds = array<i64: 1, 4, 256>}]} {
    %c0 = arith.constant 0 : index
    %c0_0 = arith.constant 0 : index
    %c0_1 = arith.constant 0 : index
    %0 = vector.load %arg2[%c0, %c0_0, %c0_1] : memref<1x4x256xf32, #tpu.memory_space<vmem>>, vector<1x4x256xf32>
    %1 = vector.shape_cast %0 : vector<1x4x256xf32> to vector<4x256xf32>
    %c0_2 = arith.constant 0 : index
    %c0_3 = arith.constant 0 : index
    %2 = vector.load %arg3[%c0_2, %c0_3] : memref<1x4xf32, #tpu.memory_space<vmem>>, vector<1x4xf32>
    %cst = arith.constant dense<0.000000e+00> : vector<1x256xf32>
    %3 = tpu.matmul %2, %1, %cst {dimension_numbers = #tpu.dot_dimension_numbers<[1], [0], [0], [1], [0, 0, 1, 1], [], []>} : vector<1x4xf32>, vector<4x256xf32>, vector<1x256xf32> -> vector<1x256xf32>
    %c0_4 = arith.constant 0 : index
    %c0_5 = arith.constant 0 : index
    %4 = vector.load %arg4[%c0_4, %c0_5] : memref<1x1xf32, #tpu.memory_space<vmem>>, vector<1x1xf32>
    %5 = vector.broadcast %4 : vector<1x1xf32> to vector<1x256xf32>
    %6 = arith.addf %3, %5 : vector<1x256xf32>
    %7 = arith.negf %6 : vector<1x256xf32>
    %8 = math.exp %7 : vector<1x256xf32>
    %cst_6 = arith.constant 1.000000e+00 : f32
    %9 = vector.broadcast %cst_6 : f32 to vector<1x256xf32>
    %10 = arith.addf %9, %8 : vector<1x256xf32>
    %11 = arith.divf %9, %10 : vector<1x256xf32>
    %12 = vector.broadcast %11 : vector<1x256xf32> to vector<4x256xf32>
    %13 = arith.mulf %1, %12 : vector<4x256xf32>
    %c0_7 = arith.constant 0 : index
    %c0_8 = arith.constant 0 : index
    %c0_9 = arith.constant 0 : index
    %14 = vector.load %arg5[%c0_7, %c0_8, %c0_9] : memref<1x4x256xf32, #tpu.memory_space<vmem>>, vector<1x4x256xf32>
    %15 = vector.shape_cast %14 : vector<1x4x256xf32> to vector<4x256xf32>
    %16 = vector.shape_cast %13 : vector<4x256xf32> to vector<1x4x256xf32>
    tpu.vector_store %arg5[%c0_7, %c0_8, %c0_9], %16 {strides = array<i32>} : memref<1x4x256xf32, #tpu.memory_space<vmem>>, vector<1x4x256xf32>,
    return
  }
  func.func @transform_0(%arg0: i32, %arg1: i32) -> (i32, i32, i32) {
    %c0_i32 = arith.constant 0 : i32
    %c0_i32_0 = arith.constant 0 : i32
    return %arg0, %c0_i32, %arg1 : i32, i32, i32
  }
  func.func @transform_1(%arg0: i32, %arg1: i32) -> (i32, i32) {
    %c0_i32 = arith.constant 0 : i32
    %c0_i32_0 = arith.constant 0 : i32
    %c0_i32_1 = arith.constant 0 : i32
    return %c0_i32, %c0_i32_0 : i32, i32
  }
  func.func @transform_2(%arg0: i32, %arg1: i32) -> (i32, i32) {
    %c0_i32 = arith.constant 0 : i32
    %c0_i32_0 = arith.constant 0 : i32
    %c0_i32_1 = arith.constant 0 : i32
    return %c0_i32, %c0_i32_0 : i32, i32
  }
  func.func @transform_3(%arg0: i32, %arg1: i32) -> (i32, i32, i32) {
    %c0_i32 = arith.constant 0 : i32
    %c0_i32_0 = arith.constant 0 : i32
    return %arg0, %c0_i32, %arg1 : i32, i32, i32
  }
}

</mosaic_0001>

<bundles_post_ra>
// kernel: tpu_custom_call.1
= control target key start
LH: loop header
LB: loop body
LE: loop exit
PB: predicated region body
PF: predicated region fallthrough
CT: control target
= control target key end

     0   :  { %s846_s0 = inlined_call_operand.hbm [shape: f32[2,4,256], index: 0, kind: input, shape index: {}]   ;;  %s847_s1 = inlined_call_operand.vmem [shape: f32[1,4], index: 1, kind: input, shape index: {}]   ;;  %s848_s2 = inlined_call_operand.<no memory space> [shape: f32[1,1], index: 2, kind: input, shape index: {}]   ;;  %s849_s3 = inlined_call_operand.hbm [shape: f32[2,4,256], index: 3, kind: output, shape index: {}]  }
   0x1   :  { %v8_v0 = vstv %s848_s2 }
   0x2   :  { %9 = vst [vmem:[#allocation2] sm:$0x1] %v8_v0 }
   0x3   :  { %10 = vsyncpa [#allocation4], 0 }
   0x4   :  { %12 = vsyncpa [#allocation4 + $0x1], 0 }
   0x5   :  { %13 = vsyncpa [#allocation5], 0 }
   0x6   :  { %15 = vsyncpa [#allocation5 + $0x1], 0  ;;  %s667_s14 = smov 0   ;;  %s669_s15 = smov 0  }
   0x7   :  { %s671_s16 = smov 0   ;;  %s673_s17 = smov 0  }
   0x8   :  { %s675_s18 = smov 0   ;;  %s677_s19 = smov 0  }
   0x9 LB: > { %s430_s2 = sadd.s32 4294967295, %s638_s19   ;;  %s431_s20 = sadd.s32 4294967294, %s638_s19   ;;  %s638_s19 = sphi %s677_s19, %s21_s19   ;;  %s634_s18 = sphi %s675_s18, %s865_s18   ;;  %s630_s17 = sphi %s673_s17, %s864_s17   ;;  %s626_s16 = sphi %s671_s16, %s863_s16   ;;  %s622_s15 = sphi %s669_s15, %s862_s15   ;;  %s618_s14 = sphi %s667_s14, %s861_s14  }
   0xa   : > { %s33_s21 = sadd.s32 1, %s634_s18  ;;  %s42_s22 = sadd.s32 1, %s626_s16 }
   0xb   : > { %p35_p0 = scmp.ge.s32.totalorder %s33_s21, 2  ;;  %p49_p1 = scmp.ne.s32.totalorder %s626_s16, %s622_s15 }
   0xc   : > { %p50_p2 = scmp.eq.s32.totalorder %s638_s19, 0  ;;  %p55_p3 = scmp.ne.s32.totalorder %s622_s15, %s618_s14 }
   0xd   : > { %s867_s21 = smov (%p35_p0, %s33_s21), 0  ;;  %p56_p5 = scmp.eq.s32.totalorder %s430_s2, 0 }
   0xe   : > { %p708_p4 = por %p50_p2, %p49_p1  ;;  %s37_s24 = ssub.s32 %s634_s18, %s867_s21 }
   0xf   : > { %p123_p6 = scmp.eq.s32.totalorder %s430_s2, 1  ;;  %p40_p7 = scmp.eq.s32.totalorder %s37_s24, 0 }
  0x10   : > { %p714_p8 = por %p56_p5, %p55_p3  ;;  %p129_p10 = scmp.eq.s32.totalorder %s431_s20, 1 }
  0x11   : > { %p718_p9 = por %p123_p6, %p49_p1  ;;  %p464_p13 = scmp.lt.s32.totalorder %s638_s19, 2 }
  0x12   : > { %s723_s27 = scalar_select %p40_p7, %s626_s16, %s42_s22  }
  0x13   : > { %s853_s26 = scalar_select %p718_p9, 1, 0 }
  0x14   : > { %p725_p11 = por %p129_p10, %p55_p3  ;;  %s155_s29 = sand.u32 1, %s626_s16  }
  0x15   : > { %s434_s30 = sshll.u32 %s155_s29, 3  ;;  %s450_s4 = sshll.u32 %s634_s18, 7 }
  0x16   : > { %s854_s28 = scalar_select %p725_p11, 1, 0 }
  0x17   : > { %s736_s7 = scalar_lea.hbm %s846_s0, %s450_s4  ;;  %s159_s8 = scalar_lea.vmem [#allocation3], %s434_s30 }
  0x18   : > { %s169_s9 = sshll.u32 %s159_s8, 4  ;;  %p742_p0 = pnand %p464_p13, %p708_p4  ;;  %s738_s9 = int_to_ptr.vmem [resolvable:$true] %s169_s9 }
  0x19   : > { %s156_s11 = scalar_lea.sflag [#allocation4], %s155_s29  ;;  %s526_s12 = scalar_lea.hbm %s736_s7, 128 }
  0x1a   : > { %p527_p3 = scmp.ne.s32.totalorder %s736_s7, %s526_s12  ;;  %p528_p5 = pneg %p742_p0 }
  0x1b   : > { %s531_s20 = scalar_lea.hbm %s846_s0, 256  ;;  %p532_p4 = scmp.lt.u32.totalorder %s736_s7, %s846_s0 }
  0x1c   : > { %p529_p6 = pnand %p528_p5, %p527_p3  ;;  %p533_p10 = scmp.lt.u32.totalorder %s531_s20, %s526_s12 }
  0x1d   : > { %p535_p12 = scmp.lt.u32.totalorder %s526_s12, %s736_s7 }
  0x1e   : > { %p530_p7 = pneg %p529_p6  ;;  %p534_p13 = por %p533_p10, %p532_p4 }
  0x20   : > { %p536_p1 = por %p535_p12, %p534_p13 }
  0x22   : > { %p537_p2 = pnand %p536_p1, %p530_p7 }
  0x24   : > { %540 = shalt.err (!%p537_p2)
}
  0x25   : > { %s541_s24 = scalar_lea.vmem %s738_s9, 128  ;;  %s640_s29 = smov [#allocation3]  }
  0x26   : > { %p542_p3 = scmp.ne.s32.totalorder %s738_s9, %s541_s24  ;;  %s546_s30 = sshll.u32 %s640_s29, 4  ;;  %s547_s30 = int_to_ptr.vmem [resolvable:$false] %s546_s30 }
  0x27   : > { %s548_s4 = scalar_lea.vmem %s547_s30, 256  ;;  %p549_p9 = scmp.lt.s32.totalorder %s738_s9, %s547_s30 }
  0x28   : > { %p544_p6 = pnand %p542_p3, %p528_p5  ;;  %p550_p4 = scmp.lt.s32.totalorder %s548_s4, %s541_s24 }
  0x2a   : > { %p545_p11 = pneg %p544_p6  ;;  %p551_p10 = por %p550_p4, %p549_p9 }
  0x2c   : > { %p552_p12 = pnand %p551_p10, %p545_p11 }
  0x2e   : > { %555 = shalt.err (!%p552_p12)
}
  0x2f   : > { %459 = dma.hbm_to_vmem [thread:$0]  (!%p742_p0), %s736_s7, 128, %s738_s9, %s156_s11  }
  0x30   : > { %p856_p1 = scmp.lt.s32.totalorder %s638_s19, 3  ;;  %p857_p2 = scmp.ge.s32.totalorder %s638_s19, 1 }
  0x32   : > { %p175_p5 = pnand %p857_p2, %p856_p1 }
  0x33   : > { %s778_s5 = sand.u32 (!%p175_p5), 1, %s622_s15  }
  0x34   : > { %178 = sbr.rel (%p175_p5) target bundleno = 326 (0x146), region = 32  ;;  %s438_s6 = sshll.u32 (!%p175_p5), %s778_s5, 3 }
  0x35   : > { %s181_s8 = scalar_lea.sflag (!%p175_p5), [#allocation4], %s778_s5  ;;  %s184_s10 = scalar_lea.vmem (!%p175_p5), [#allocation3], %s438_s6 }
  0x3b   : > { %609 = dma.done.wait (%p714_p8), %s181_s8, 128  }
  0x3c   : > { %611 = vsyncadd (%p714_p8), %s181_s8, 4294967168  ;;  %v641_v1 = vmov 0.0   ;;  %v642_v2 = vmov 0   ;;  %v209_v3 = vld [vmem:[%s184_s10] sm:$0xff]  ;;  %vm227_vm0 = vcmask 1043456   ;;  %vm223_vm1 = vcmask 31744  }
  0x3d   : > { %296 = vmatprep.mubr.f32.mxu0 %v641_v1  ;;  %516 = vset.pattern.permute.xlu0 %v642_v2  ;;  %v211_v4 = vld [vmem:[#allocation2] sm:$0x1]  ;;  %v222_v5 = vcombine.high %v209_v3, %v209_v3  ;;  %v217_v7 = vlaneseq  ;;  %s451_s25 = sshll.u32 %s630_s17, 7  ;;  %s206_s11 = scalar_lea.vmem [#allocation6], %s438_s6 }
  0x3e   : > { %214 = vperm.xlu0 %516, %v211_v4   ;;  %v210_v6 = vld [vmem:[%s847_s1] sm:$0x1]  ;;  %s346_s12 = sshll.u32 %s206_s11, 4  ;;  %s797_s20 = scalar_lea.hbm %s849_s3, %s451_s25  ;;  %s799_s12 = int_to_ptr.vmem [resolvable:$true] %s346_s12 }
  0x3f   : > { %440 = vmatprep.subr.msk.mxu0 %vm227_vm0, %v222_v5  ;;  %v218_v8 = vshrl.u32 %v217_v7, 7  ;;  %s330_s22 = scalar_lea.sflag [#allocation5], %s778_s5  ;;  %s556_s23 = scalar_lea.vmem %s799_s12, 128 }
  0x40   : > { %441 = vmatpush1.msk.msra.mxu0 %vm227_vm0, %v209_v3  ;;  %p557_p8 = scmp.ne.s32.totalorder %s799_s12, %s556_s23  ;;  %p858_p9 = scmp.ne.s32.totalorder %s853_s26, 0 }
  0x41   : > { %442 = vmatmul.mubr.msk.f32.vlgmr.msra.gmra.mrb[0].mxu0 %vm223_vm1, %v210_v6  ;;  %v219_v9 = vsub.s32 0, %v218_v8  ;;  %s643_s17 = smov [#allocation6]  }
  0x42   : > { %p558_p11 = pnand %p557_p8, %p858_p9  ;;  %s560_s24 = sshll.u32 %s643_s17, 4  ;;  %s561_s24 = int_to_ptr.vmem [resolvable:$false] %s560_s24 }
  0x43   : > { %s562_s29 = scalar_lea.vmem %s561_s24, 256  ;;  %p563_p7 = scmp.lt.s32.totalorder %s799_s12, %s561_s24 }
  0x44   : > { %p559_p0 = pneg %p558_p11  ;;  %p564_p13 = scmp.lt.s32.totalorder %s562_s29, %s556_s23 }
  0x46   : > { %p565_p3 = por %p564_p13, %p563_p7 }
  0x48   : > { %p566_p6 = pnand %p565_p3, %p559_p0 }
  0xbd   : > { %v215_v10 = vpop.permute.xlu0 %214 }
  0xbe   : > { %v220_v11 = vrot.slane %v215_v10, %v219_v9 }
 0x114   : > { %v298_v12 = vpop.f32.mrb[0].mxu0 }
 0x115   : > { %v299_v13 = vadd.f32 %v298_v12, %v220_v11  ;;  %v300_v14 = vpop.f32.mrb[1].mxu0 }
 0x116   : > { %v301_v15 = vadd.f32 %v300_v14, %v220_v11 }
 0x117   : > { %v443_v16 = vmul.f32 -1.442695, %v299_v13 }
 0x118   : > { %v444_v17 = vmul.f32 -1.442695, %v301_v15 }
 0x119   : > { %518 = vpow2.f32 %v443_v16 }
 0x11a   : > { %520 = vpow2.f32 %v444_v17 }
 0x123   : > { %v519_v18 = vpop.eup %518 }
 0x124   : > { %v521_v19 = vpop.eup %520  ;;  %v309_v20 = vadd.f32 1.0, %v519_v18 }
 0x125   : > { %v310_v21 = vadd.f32 1.0, %v521_v19 }
 0x126   : > { %522 = vrcp.f32 %v309_v20 }
 0x127   : > { %524 = vrcp.f32 %v310_v21 }
 0x130   : > { %v523_v22 = vpop.eup %522 }
 0x131   : > { %v525_v23 = vpop.eup %524  ;;  %v318_v24 = vrot.slane %v523_v22, %v219_v9 }
 0x132   : > { %v322_v25 = vrot.slane %v525_v23, %v219_v9 }
 0x134   : > { %v325_v26 = vcombine.low %v318_v24, %v322_v25 }
 0x136   : > { %v327_v27 = vmul.f32 %v325_v26, %v209_v3 }
 0x138   : > { %328 = vst [vmem:[%s206_s11] sm:$0xff] %v327_v27 }
 0x139   : > { %569 = shalt.err (!%p566_p6)
}
 0x13a   : > { %s570_s30 = scalar_lea.hbm %s797_s20, 128  ;;  %s574_s6 = scalar_lea.hbm %s849_s3, 256 }
 0x13b   : > { %p571_p4 = scmp.ne.s32.totalorder %s797_s20, %s570_s30  ;;  %p575_p1 = scmp.lt.u32.totalorder %s797_s20, %s849_s3 }
 0x13c   : > { %p576_p2 = scmp.lt.u32.totalorder %s574_s6, %s570_s30  ;;  %p578_p8 = scmp.lt.u32.totalorder %s570_s30, %s797_s20 }
 0x13d   : > { %p572_p10 = pnand %p571_p4, %p858_p9 }
 0x13e   : > { %p577_p5 = por %p576_p2, %p575_p1 }
 0x13f   : > { %p573_p12 = pneg %p572_p10 }
 0x140   : > { %p579_p11 = por %p578_p8, %p577_p5 }
 0x142   : > { %p580_p0 = pnand %p579_p11, %p573_p12 }
 0x144   : > { %583 = shalt.err (!%p580_p0)
}
 0x145   : > { %454 = dma.vmem_to_hbm [thread:$0]  (%p858_p9), %s799_s12, 128, %s797_s20, %s330_s22  }
 0x146 PF: > { %s358_s7 = sand.u32 1, %s618_s14   ;;  %p859_p7 = scmp.ne.s32.totalorder %s854_s28, 0 }
 0x147   : > { %p860_p13 = scmp.ge.s32.totalorder %s638_s19, 2  ;;  %s359_s9 = scalar_lea.sflag [#allocation5], %s358_s7 }
 0x149   : > { %p461_p3 = pnand %p860_p13, %p859_p7 }
 0x14b   : > { %613 = dma.done.wait (!%p461_p3), %s359_s9, 128  }
 0x14c   : > { %615 = vsyncadd (!%p461_p3), %s359_s9, 4294967168  ;;  %s21_s19 = sadd.s32 1, %s638_s19   ;;  %s861_s14 = smov %s622_s15 }
 0x14d   : > { %p18_p6 = scmp.ge.s32.totalorder %s21_s19, 4   ;;  %s862_s15 = smov %s626_s16 }
 0x14e   : > { %s863_s16 = smov %s723_s27  ;;  %s864_s17 = smov %s634_s18 }
 0x14f   : > { %s865_s18 = smov %s867_s21  ;;  %20 = sbr.rel (!%p18_p6) target bundleno = 9 (0x9), region = 77 }
 0x156   :  { %364 = vsyncpa [#allocation4], 1 }
 0x157   :  { %366 = vsyncpa [#allocation4 + $0x1], 1 }
 0x158   :  { %367 = vsyncpa [#allocation5], 1 }
 0x159   :  { %369 = vsyncpa [#allocation5 + $0x1], 1 }

</bundles_post_ra>
